<compile_context>
chip_gen: v7x
topology: tpu7x:2x2x1
jax: 0.10.0
libtpu: 0.0.40
codegen_flags: <defaults>
</compile_context>

<pallas_src>
import jax
import jax.numpy as jnp
from jax.experimental import pallas as pl
from jax.experimental.pallas import tpu as pltpu

DIM = 512          # feature dim produced by the (stubbed) backbone
HIDDEN = 256       # classifier hidden width
NUM_CLASSES = 2
CLS_PAD = 128      # class dim padded to one full lane width


def _round_up(x, m):
    return ((x + m - 1) // m) * m


def _cdiv(a, b):
    return -(-a // b)


def _qkv_classifier_kernel(xs_ref, wp_ref, bp_ref,
                           w1_ref, b1_ref,
                           w2_ref, b2_ref,
                           out_ref):
    _, tb, c = xs_ref.shape

    # ---- feature extractor (shared weights for x1/x2/x3) -------------------
    # TODO(synk): the torchvision pretrained backbones (swin_s / efficientnet /
    # resnet18 / convnext / mobilenet) have no clean Pallas equivalent; they are
    # replaced by a deterministic GAP + Linear(C, 512) stub producing the same
    # (B, 512) feature the rest of the forward pass expects.
    #
    # q/k/v were stacked wrapper-side into a single (3, TB, C) block -> one DMA
    # per grid step and one MXU weight push with 3x larger M. The reshape is
    # layout-preserving (TB is a multiple of 16), so no in-kernel VMEM copy
    # (the old jnp.concatenate copy is gone).
    xs = xs_ref[...].reshape(3 * tb, c)
    f_all = jnp.dot(xs, wp_ref[...],
                    preferred_element_type=jnp.float32) + bp_ref[...]
    f1 = f_all[0:tb]           # q
    f2 = f_all[tb:2 * tb]      # k
    f3 = f_all[2 * tb:3 * tb]  # v

    # ---- qkv_fusion on (B, 512, 1, 1) tensors ------------------------------
    # attention = softmax(q @ k^T) over a size-1 axis: each 1x1 matmul is an
    # elementwise product and the softmax is identically 1 (kept, including the
    # inf -> NaN edge case, for fidelity with the PyTorch module).
    s = f1 * f2
    attn = jnp.exp(s - s)
    fused = attn * f3

    # ---- AdaptiveAvgPool2d((1,1)) over 1x1 spatial = identity; view(B, 512) -
    # ---- classifier: Linear(512,256) -> ReLU -> Dropout(eval=id)
    # ---- -> Linear(256, 2 padded to 128). Both matmuls bf16-fed, f32 accum.
    h = jnp.dot(fused.astype(w1_ref.dtype), w1_ref[...],
                preferred_element_type=jnp.float32) + b1_ref[...]
    h = jnp.maximum(h, 0.0)
    logits = jnp.dot(h.astype(w2_ref.dtype), w2_ref[...],
                     preferred_element_type=jnp.float32) + b2_ref[...]

    # mask the padded class columns, then softmax over classes (dim=-1)
    col = jax.lax.broadcasted_iota(jnp.int32, logits.shape, 1)
    logits = jnp.where(col < NUM_CLASSES, logits, -jnp.inf)
    m = jnp.max(logits, axis=-1, keepdims=True)
    e = jnp.exp(logits - m)
    out_ref[...] = (e / jnp.sum(e, axis=-1, keepdims=True)).astype(out_ref.dtype)


def classifier_comparision_qkv(x1, x2, x3, params, *, mxu_dtype=jnp.bfloat16):
    """JAX/Pallas equivalent of classifier_comparision_QKV.forward (eval mode).

    MXU-feeding operands (pooled activations, wp, w1, w2) are cast to
    `mxu_dtype` (bf16 by default; pass jnp.float32 for exact f32). All VPU/EUP
    math (bias adds, ReLU, softmax) stays in f32.
    """
    B = x1.shape[0]

    # glue: stack q/k/v then global average pool NCHW -> (3, B, C); one fused
    # XLA op chain feeding the kernel (no separate per-input round trips).
    xs = jnp.stack([x1, x2, x3], axis=0).astype(jnp.float32)   # (3, B, C, H, W)
    xs = jnp.mean(xs, axis=(3, 4))                             # (3, B, C)
    C = xs.shape[2]

    # Batch tile: multiple of 16 (bf16 sublane packing), up to 1024 rows (the
    # whole double-buffered working set is only a few MiB), but keep >= 2 grid
    # steps when the batch allows so the "parallel" axis can shard across the
    # two TensorCores on v7x.
    TB = min(1024, _round_up(B, 16))
    if B >= 32:
        TB = min(TB, _round_up(_cdiv(B, 2), 16))
    B_pad = _round_up(B, TB)
    if B_pad != B:
        xs = jnp.pad(xs, ((0, 0), (0, B_pad - B), (0, 0)))
    xs = xs.astype(mxu_dtype)

    wp = params["wp"].astype(mxu_dtype)
    bp = params["bp"].astype(jnp.float32)
    w1 = params["w1"].astype(mxu_dtype)
    b1 = params["b1"].astype(jnp.float32)
    # Lane-dense class dim: zero-pad NUM_CLASSES -> 128 so stores are unmasked.
    # w2 is cast to mxu_dtype so the final matmul also runs bf16 on the MXU.
    w2 = jnp.zeros((HIDDEN, CLS_PAD), jnp.float32).at[:, :NUM_CLASSES].set(
        params["w2"].astype(jnp.float32)).astype(mxu_dtype)
    b2 = jnp.zeros((1, CLS_PAD), jnp.float32).at[:, :NUM_CLASSES].set(
        params["b2"].astype(jnp.float32))

    grid = (B_pad // TB,)

    def w_spec(a):
        # constant block index -> weights stay resident in VMEM across steps
        return pl.BlockSpec(a.shape, lambda i, _nd=a.ndim: (0,) * _nd)

    out = pl.pallas_call(
        _qkv_classifier_kernel,
        out_shape=jax.ShapeDtypeStruct((B_pad, CLS_PAD), jnp.float32),
        grid=grid,
        in_specs=[pl.BlockSpec((3, TB, C), lambda i: (0, i, 0)),
                  w_spec(wp), w_spec(bp),
                  w_spec(w1), w_spec(b1),
                  w_spec(w2), w_spec(b2)],
        out_specs=pl.BlockSpec((TB, CLS_PAD), lambda i: (i, 0)),
        compiler_params=pltpu.CompilerParams(
            dimension_semantics=("parallel",),   # megacore / 2-TC sharding
            vmem_limit_bytes=48 << 20),          # <= 48 MiB: safe on v7x's 64 MiB VMEM
    )(xs, wp, bp, w1, b1, w2, b2)

    return out[:B, :NUM_CLASSES]


def init_params(key, in_channels):
    kwp, kw1, kb1, kw2, kb2 = jax.random.split(key, 5)
    return {
        # feature-stub projection (shared across x1/x2/x3)
        "wp": jax.random.normal(kwp, (in_channels, DIM), jnp.float32) * 0.1,
        "bp": jnp.zeros((1, DIM), jnp.float32),
        # classifier: Linear(512, 256)
        "w1": jax.random.normal(kw1, (DIM, HIDDEN), jnp.float32) * (1.0 / DIM ** 0.5),
        "b1": jax.random.normal(kb1, (1, HIDDEN), jnp.float32) * 0.01,
        # classifier: Linear(256, num_classes)
        "w2": jax.random.normal(kw2, (HIDDEN, NUM_CLASSES), jnp.float32) * (1.0 / HIDDEN ** 0.5),
        "b2": jax.random.normal(kb2, (1, NUM_CLASSES), jnp.float32) * 0.01,
    }


if __name__ == "__main__":
    key = jax.random.PRNGKey(0)
    kx1, kx2, kx3, kparams = jax.random.split(key, 4)

    B, C, H, W = 2, 4, 16, 16
    x1 = jax.random.normal(kx1, (B, C, H, W), jnp.float32)
    x2 = jax.random.normal(kx2, (B, C, H, W), jnp.float32)
    x3 = jax.random.normal(kx3, (B, C, H, W), jnp.float32)

    params = init_params(kparams, C)

    out = classifier_comparision_qkv(x1, x2, x3, params)
    out = jax.block_until_ready(out)

    assert out.shape == (B, NUM_CLASSES)
    # softmax rows must sum to 1
    assert jnp.allclose(jnp.sum(out, axis=-1), 1.0, atol=1e-5)
    print("KERNEL_OK")
</pallas_src>

<mosaic_0001>
module attributes {stable_mosaic.version = 11 : i64} {
  func.func @_qkv_classifier_kernel(%arg0: i32, %arg1: memref<3x16x4xbf16, #tpu.memory_space<vmem>>, %arg2: memref<4x512xbf16, #tpu.memory_space<vmem>>, %arg3: memref<1x512xf32, #tpu.memory_space<vmem>>, %arg4: memref<512x256xbf16, #tpu.memory_space<vmem>>, %arg5: memref<1x256xf32, #tpu.memory_space<vmem>>, %arg6: memref<256x128xbf16, #tpu.memory_space<vmem>>, %arg7: memref<1x128xf32, #tpu.memory_space<vmem>>, %arg8: memref<16x128xf32, #tpu.memory_space<vmem>>) attributes {dimension_semantics = [#tpu.dimension_semantics<parallel>], iteration_bounds = array<i64: 1>, scalar_prefetch = 0 : i64, scratch_operands = 0 : i64, tpu.core_type = #tpu.core_type<tc>, window_params = [{transform_indices = @transform_0, window_bounds = array<i64: 3, 16, 4>}, {pipeline_mode = #tpu.pipeline_mode<synchronous>, transform_indices = @transform_1, window_bounds = array<i64: 4, 512>}, {pipeline_mode = #tpu.pipeline_mode<synchronous>, transform_indices = @transform_2, window_bounds = array<i64: 1, 512>}, {pipeline_mode = #tpu.pipeline_mode<synchronous>, transform_indices = @transform_3, window_bounds = array<i64: 512, 256>}, {pipeline_mode = #tpu.pipeline_mode<synchronous>, transform_indices = @transform_4, window_bounds = array<i64: 1, 256>}, {pipeline_mode = #tpu.pipeline_mode<synchronous>, transform_indices = @transform_5, window_bounds = array<i64: 256, 128>}, {pipeline_mode = #tpu.pipeline_mode<synchronous>, transform_indices = @transform_6, window_bounds = array<i64: 1, 128>}, {transform_indices = @transform_7, window_bounds = array<i64: 16, 128>}]} {
    %c0 = arith.constant 0 : index
    %c0_0 = arith.constant 0 : index
    %c0_1 = arith.constant 0 : index
    %0 = vector.load %arg1[%c0, %c0_0, %c0_1] : memref<3x16x4xbf16, #tpu.memory_space<vmem>>, vector<3x16x4xbf16>
    %1 = vector.shape_cast %0 : vector<3x16x4xbf16> to vector<48x4xbf16>
    %c0_2 = arith.constant 0 : index
    %c0_3 = arith.constant 0 : index
    %2 = vector.load %arg2[%c0_2, %c0_3] : memref<4x512xbf16, #tpu.memory_space<vmem>>, vector<4x512xbf16>
    %cst = arith.constant dense<0.000000e+00> : vector<48x512xf32>
    %3 = tpu.matmul %1, %2, %cst {dimension_numbers = #tpu.dot_dimension_numbers<[1], [0], [0], [1], [0, 0, 1, 1], [], []>} : vector<48x4xbf16>, vector<4x512xbf16>, vector<48x512xf32> -> vector<48x512xf32>
    %c0_4 = arith.constant 0 : index
    %c0_5 = arith.constant 0 : index
    %4 = vector.load %arg3[%c0_4, %c0_5] : memref<1x512xf32, #tpu.memory_space<vmem>>, vector<1x512xf32>
    %5 = vector.broadcast %4 : vector<1x512xf32> to vector<48x512xf32>
    %6 = arith.addf %3, %5 : vector<48x512xf32>
    %7 = vector.extract_strided_slice %6 {offsets = [0, 0], sizes = [16, 512], strides = [1, 1]} : vector<48x512xf32> to vector<16x512xf32>
    %8 = vector.extract_strided_slice %6 {offsets = [16, 0], sizes = [16, 512], strides = [1, 1]} : vector<48x512xf32> to vector<16x512xf32>
    %9 = vector.extract_strided_slice %6 {offsets = [32, 0], sizes = [16, 512], strides = [1, 1]} : vector<48x512xf32> to vector<16x512xf32>
    %10 = arith.mulf %7, %8 : vector<16x512xf32>
    %11 = arith.subf %10, %10 : vector<16x512xf32>
    %12 = math.exp %11 : vector<16x512xf32>
    %13 = arith.mulf %12, %9 : vector<16x512xf32>
    %14 = arith.truncf %13 : vector<16x512xf32> to vector<16x512xbf16>
    %c0_6 = arith.constant 0 : index
    %c0_7 = arith.constant 0 : index
    %15 = vector.load %arg4[%c0_6, %c0_7] : memref<512x256xbf16, #tpu.memory_space<vmem>>, vector<512x256xbf16>
    %cst_8 = arith.constant dense<0.000000e+00> : vector<16x256xf32>
    %16 = tpu.matmul %14, %15, %cst_8 {dimension_numbers = #tpu.dot_dimension_numbers<[1], [0], [0], [1], [0, 0, 1, 1], [], []>} : vector<16x512xbf16>, vector<512x256xbf16>, vector<16x256xf32> -> vector<16x256xf32>
    %c0_9 = arith.constant 0 : index
    %c0_10 = arith.constant 0 : index
    %17 = vector.load %arg5[%c0_9, %c0_10] : memref<1x256xf32, #tpu.memory_space<vmem>>, vector<1x256xf32>
    %18 = vector.broadcast %17 : vector<1x256xf32> to vector<16x256xf32>
    %19 = arith.addf %16, %18 : vector<16x256xf32>
    %cst_11 = arith.constant 0.000000e+00 : f32
    %20 = vector.broadcast %cst_11 : f32 to vector<16x256xf32>
    %21 = arith.maximumf %19, %20 : vector<16x256xf32>
    %22 = arith.truncf %21 : vector<16x256xf32> to vector<16x256xbf16>
    %c0_12 = arith.constant 0 : index
    %c0_13 = arith.constant 0 : index
    %23 = vector.load %arg6[%c0_12, %c0_13] : memref<256x128xbf16, #tpu.memory_space<vmem>>, vector<256x128xbf16>
    %cst_14 = arith.constant dense<0.000000e+00> : vector<16x128xf32>
    %24 = tpu.matmul %22, %23, %cst_14 {dimension_numbers = #tpu.dot_dimension_numbers<[1], [0], [0], [1], [0, 0, 1, 1], [], []>} : vector<16x256xbf16>, vector<256x128xbf16>, vector<16x128xf32> -> vector<16x128xf32>
    %c0_15 = arith.constant 0 : index
    %c0_16 = arith.constant 0 : index
    %25 = vector.load %arg7[%c0_15, %c0_16] : memref<1x128xf32, #tpu.memory_space<vmem>>, vector<1x128xf32>
    %26 = vector.broadcast %25 : vector<1x128xf32> to vector<16x128xf32>
    %27 = arith.addf %24, %26 : vector<16x128xf32>
    %28 = tpu.iota {dimensions = array<i32: 1>} : vector<16x128xi32>
    %c2_i32 = arith.constant 2 : i32
    %29 = vector.broadcast %c2_i32 : i32 to vector<16x128xi32>
    %30 = arith.cmpi slt, %28, %29 : vector<16x128xi32>
    %cst_17 = arith.constant 0xFF800000 : f32
    %31 = vector.broadcast %cst_17 : f32 to vector<16x128xf32>
    %32 = arith.select %30, %27, %31 : vector<16x128xi1>, vector<16x128xf32>
    %cst_18 = arith.constant dense<0xFF800000> : vector<16xf32>
    %33 = vector.multi_reduction <maximumf>, %32, %cst_18 [1] : vector<16x128xf32> to vector<16xf32>
    %34 = vector.shape_cast %33 : vector<16xf32> to vector<16x1xf32>
    %35 = vector.broadcast %34 : vector<16x1xf32> to vector<16x128xf32>
    %36 = arith.subf %32, %35 : vector<16x128xf32>
    %37 = math.exp %36 : vector<16x128xf32>
    %cst_19 = arith.constant dense<0.000000e+00> : vector<16xf32>
    %38 = vector.multi_reduction <add>, %37, %cst_19 [1] : vector<16x128xf32> to vector<16xf32>
    %39 = vector.shape_cast %38 : vector<16xf32> to vector<16x1xf32>
    %40 = vector.broadcast %39 : vector<16x1xf32> to vector<16x128xf32>
    %41 = arith.divf %37, %40 : vector<16x128xf32>
    %c0_20 = arith.constant 0 : index
    %c0_21 = arith.constant 0 : index
    %42 = vector.load %arg8[%c0_20, %c0_21] : memref<16x128xf32, #tpu.memory_space<vmem>>, vector<16x128xf32>
    tpu.vector_store %arg8[%c0_20, %c0_21], %41 {strides = array<i32>} : memref<16x128xf32, #tpu.memory_space<vmem>>, vector<16x128xf32>,
    return
  }
  func.func @transform_0(%arg0: i32) -> (i32, i32, i32) {
    %c0_i32 = arith.constant 0 : i32
    %c0_i32_0 = arith.constant 0 : i32
    %c0_i32_1 = arith.constant 0 : i32
    return %c0_i32, %arg0, %c0_i32_0 : i32, i32, i32
  }
  func.func @transform_1(%arg0: i32) -> (i32, i32) {
    %c0_i32 = arith.constant 0 : i32
    %c0_i32_0 = arith.constant 0 : i32
    %c0_i32_1 = arith.constant 0 : i32
    return %c0_i32, %c0_i32_0 : i32, i32
  }
  func.func @transform_2(%arg0: i32) -> (i32, i32) {
    %c0_i32 = arith.constant 0 : i32
    %c0_i32_0 = arith.constant 0 : i32
    %c0_i32_1 = arith.constant 0 : i32
    return %c0_i32, %c0_i32_0 : i32, i32
  }
  func.func @transform_3(%arg0: i32) -> (i32, i32) {
    %c0_i32 = arith.constant 0 : i32
    %c0_i32_0 = arith.constant 0 : i32
    %c0_i32_1 = arith.constant 0 : i32
    return %c0_i32, %c0_i32_0 : i32, i32
  }
  func.func @transform_4(%arg0: i32) -> (i32, i32) {
    %c0_i32 = arith.constant 0 : i32
    %c0_i32_0 = arith.constant 0 : i32
    %c0_i32_1 = arith.constant 0 : i32
    return %c0_i32, %c0_i32_0 : i32, i32
  }
  func.func @transform_5(%arg0: i32) -> (i32, i32) {
    %c0_i32 = arith.constant 0 : i32
    %c0_i32_0 = arith.constant 0 : i32
    %c0_i32_1 = arith.constant 0 : i32
    return %c0_i32, %c0_i32_0 : i32, i32
  }
  func.func @transform_6(%arg0: i32) -> (i32, i32) {
    %c0_i32 = arith.constant 0 : i32
    %c0_i32_0 = arith.constant 0 : i32
    %c0_i32_1 = arith.constant 0 : i32
    return %c0_i32, %c0_i32_0 : i32, i32
  }
  func.func @transform_7(%arg0: i32) -> (i32, i32) {
    %c0_i32 = arith.constant 0 : i32
    %c0_i32_0 = arith.constant 0 : i32
    return %arg0, %c0_i32 : i32, i32
  }
}

</mosaic_0001>

<bundles_post_ra>
// kernel: tpu_custom_call.1
= control target key start
LH: loop header
LB: loop body
LE: loop exit
PB: predicated region body
PF: predicated region fallthrough
CT: control target
= control target key end

     0   :  { %12 = vsyncpa [#allocation3], 0  ;;  %s1506_s0 = inlined_call_operand.vmem [shape: bf16[3,16,4], index: 0, kind: input, shape index: {}]   ;;  %s1507_s1 = inlined_call_operand.vmem [shape: bf16[4,512], index: 1, kind: input, shape index: {}]   ;;  %s1508_s2 = inlined_call_operand.vmem [shape: f32[1,512], index: 2, kind: input, shape index: {}]   ;;  %s1509_s3 = inlined_call_operand.hbm [shape: bf16[512,256], index: 3, kind: input, shape index: {}]   ;;  %s1510_s4 = inlined_call_operand.vmem [shape: f32[1,256], index: 4, kind: input, shape index: {}]   ;;  %s1511_s5 = inlined_call_operand.hbm [shape: bf16[256,128], index: 5, kind: input, shape index: {}]   ;;  %s1512_s6 = inlined_call_operand.vmem [shape: f32[1,128], index: 6, kind: input, shape index: {}]   ;;  %s1513_s7 = inlined_call_operand.hbm [shape: f32[16,128], index: 7, kind: output, shape index: {}]  }
   0x1   :  { %13 = vsyncpa [#allocation6], 0 }
   0x2   :  { %14 = vsyncpa [#allocation4], 0  ;;  %s1361_s24 = smov [#allocation2]   ;;  %s1289_s28 = scalar_lea.hbm %s1509_s3, 8192 }
   0x3   :  { %s26_s25 = sshll.u32 %s1361_s24, 4  ;;  %p1290_p0 = scmp.ne.s32.totalorder %s1509_s3, %s1289_s28  ;;  %s27_s25 = int_to_ptr.vmem [resolvable:$true] %s26_s25 }
   0x4   :  { %p1293_p1 = scmp.lt.u32.totalorder %s1289_s28, %s1509_s3 }
   0x6   :  { %p1295_p2 = pnand %p1293_p1, %p1290_p0 }
   0x8   :  { %1298 = shalt.err (!%p1295_p2)
}
   0x9   :  { %s1299_s10 = scalar_lea.vmem %s27_s25, 8192  ;;  %p1304_p4 = scmp.lt.s32.totalorder %s27_s25, %s27_s25 }
   0xa   :  { %p1300_p3 = scmp.ne.s32.totalorder %s27_s25, %s1299_s10  ;;  %p1305_p5 = scmp.lt.s32.totalorder %s1299_s10, %s1299_s10 }
   0xc   :  { %p1306_p6 = por %p1305_p5, %p1304_p4 }
   0xe   :  { %p1307_p7 = pnand %p1306_p6, %p1300_p3 }
  0x10   :  { %1310 = shalt.err (!%p1307_p7)
}
  0x11   :  { %s1362_s11 = smov 128   ;;  %s1363_s12 = smov 8  }
  0x12   :  { %32 = dma.hbm_to_vmem [thread:$0]  %s1509_s3, 8192, %s27_s25, [#allocation3], %s1362_s11, %s1362_s11, %s1363_s12  }
  0x13   :  { %s1364_s15 = smov [#allocation5]   ;;  %s1311_s19 = scalar_lea.hbm %s1511_s5, 2048 }
  0x14   :  { %s40_s16 = sshll.u32 %s1364_s15, 4  ;;  %p1312_p8 = scmp.ne.s32.totalorder %s1511_s5, %s1311_s19  ;;  %s41_s16 = int_to_ptr.vmem [resolvable:$true] %s40_s16 }
  0x15   :  { %p1315_p9 = scmp.lt.u32.totalorder %s1311_s19, %s1511_s5 }
  0x17   :  { %p1317_p10 = pnand %p1315_p9, %p1312_p8 }
  0x19   :  { %1320 = shalt.err (!%p1317_p10)
}
  0x1a   :  { %s1321_s24 = scalar_lea.vmem %s41_s16, 2048  ;;  %p1326_p12 = scmp.lt.s32.totalorder %s41_s16, %s41_s16 }
  0x1b   :  { %p1322_p11 = scmp.ne.s32.totalorder %s41_s16, %s1321_s24  ;;  %p1327_p13 = scmp.lt.s32.totalorder %s1321_s24, %s1321_s24 }
  0x1d   :  { %p1328_p0 = por %p1327_p13, %p1326_p12 }
  0x1f   :  { %p1329_p1 = pnand %p1328_p0, %p1322_p11 }
  0x21   :  { %1332 = shalt.err (!%p1329_p1)
}
  0x22   :  { %s1365_s3 = smov 64   ;;  %s1366_s25 = smov 4  }
  0x23   :  { %46 = dma.hbm_to_vmem [thread:$0]  %s1511_s5, 2048, %s41_s16, [#allocation6], %s1365_s3, %s1365_s3, %s1366_s25  }
  0x24   :  { %1355 = dma.done.wait [#allocation3], 8192  }
  0x25   :  { %1356 = vsyncadd [#allocation3], 4294959104 }
  0x26   :  { %1357 = dma.done.wait [#allocation6], 2048  }
  0x27   :  { %1358 = vsyncadd [#allocation6], 4294965248  ;;  %v65_v0 = vlaneseq  ;;  %v1367_v1 = vmov 1983009808   ;;  %v1368_v3 = vmov 0   ;;  %v62_v7 = vld [vmem:[%s1507_s1] sm:$0xff] }
  0x28   :  { %v103_v2 = vunpack.c.l.s4 %v1367_v1  ;;  %173 = vmatprep.mubr.bf16.mxu0 %v1368_v3  ;;  %vm128_vm0 = vcmask 1041408   ;;  %v101_v8 = vcombine.high %v62_v7, %v62_v7  ;;  %v1153_v13 = vld [vmem:[#allocation2 + $0x4] ss:$8 sps:$4 sm:$0xff]   ;;  %v1155_v14 = vld [vmem:[#allocation2] ss:$8 sps:$4 sm:$0xff]   ;;  %vm118_vm1 = vcmask 31744  }
  0x29   :  { %v1439_v4 = vshrl.u32 %v65_v0, 7  ;;  %v1150_v15 = vld [vmem:[%s1506_s0] sm:$0xff]   ;;  %v1156_v17 = vld [vmem:[#allocation2 + $0x14] ss:$8 sps:$4 sm:$0xff]   ;;  %707 = vmatprep.subr.bf16.mxu1 %v1153_v13  ;;  %v1158_v19 = vld [vmem:[#allocation2 + $0x10] ss:$8 sps:$4 sm:$0xff]  }
  0x2a   :  { %v104_v5 = vunpack.c.0.s8 %v103_v2  ;;  %708 = vmatpush1.bf16.msra.mxu1 %v1155_v14  ;;  %v1159_v20 = vld [vmem:[#allocation2 + $0x24] ss:$8 sps:$4 sm:$0xff]   ;;  %v1161_v21 = vld [vmem:[#allocation2 + $0x20] ss:$8 sps:$4 sm:$0xff]   ;;  %v1162_v22 = vld [vmem:[#allocation2 + $0x34] ss:$8 sps:$4 sm:$0xff]  }
  0x2b   :  { %709 = vmatprep.subr.bf16.mxu1 %v1156_v17  ;;  %v1151_v23 = vld [vmem:[%s1506_s0 + $0x8] sm:$0xff]   ;;  %v1164_v24 = vld [vmem:[#allocation2 + $0x30] ss:$8 sps:$4 sm:$0xff]   ;;  %v1168_v28 = vld [vmem:[#allocation2 + $0x54] ss:$8 sps:$4 sm:$0xff]  }
  0x2c   :  { %v107_v6 = vsub.s32 %v104_v5, %v1439_v4  ;;  %v1175_v25 = vld [vmem:[#allocation2 + $0x104] ss:$8 sps:$4 sm:$0xff]   ;;  %v1167_v27 = vld [vmem:[#allocation2 + $0x40] ss:$8 sps:$4 sm:$0xff]   ;;  %v1152_v29 = vld [vmem:[%s1506_s0 + $0x10] sm:$0xff]  }
  0x2d   :  { %v1165_v26 = vld [vmem:[#allocation2 + $0x44] ss:$8 sps:$4 sm:$0xff]   ;;  %v1170_v30 = vld [vmem:[#allocation2 + $0x50] ss:$8 sps:$4 sm:$0xff]   ;;  %v1176_v32 = vld [vmem:[#allocation2 + $0x60] ss:$8 sps:$4 sm:$0xff]  }
  0x2e   :  { %v108_v9 = vrot.slane %v62_v7, %v107_v6  ;;  %v115_v10 = vrot.slane %v101_v8, %v107_v6  ;;  %710 = vmatpush1.bf16.msra.mxu1 %v1158_v19  ;;  %v1171_v31 = vld [vmem:[#allocation2 + $0x64] ss:$8 sps:$4 sm:$0xff]   ;;  %v1173_v33 = vld [vmem:[#allocation2 + $0x100] ss:$8 sps:$4 sm:$0xff]   ;;  %v1177_v34 = vld [vmem:[#allocation2 + $0x74] ss:$8 sps:$4 sm:$0xff]  }
  0x2f   :  { %711 = vmatprep.subr.bf16.mxu1 %v1159_v20  ;;  %v1181_v35 = vld [vmem:[#allocation2 + $0x114] ss:$8 sps:$4 sm:$0xff]   ;;  %v1179_v36 = vld [vmem:[#allocation2 + $0x110] ss:$8 sps:$4 sm:$0xff]   ;;  %v1183_v38 = vld [vmem:[#allocation2 + $0x84] ss:$8 sps:$4 sm:$0xff]  }
  0x30   :  { %v116_v11 = vcombine.high %v108_v9, %v108_v9  ;;  %v130_v12 = vsel %vm128_vm0, %v108_v9, 0  ;;  %v117_v16 = vcombine.high %v115_v10, %v115_v10  ;;  %v136_v18 = vsel %vm128_vm0, %v115_v10, 0  ;;  %v1182_v37 = vld [vmem:[#allocation2 + $0x70] ss:$8 sps:$4 sm:$0xff]   ;;  %v1187_v39 = vld [vmem:[#allocation2 + $0x124] ss:$8 sps:$4 sm:$0xff]  }
  0x31   :  { %v1185_v40 = vld [vmem:[#allocation2 + $0x120] ss:$8 sps:$4 sm:$0xff]   ;;  %v1189_v42 = vld [vmem:[#allocation2 + $0x94] ss:$8 sps:$4 sm:$0xff]   ;;  %v1191_v44 = vld [vmem:[#allocation2 + $0x130] ss:$8 sps:$4 sm:$0xff]  }
  0x32   :  { %1021 = vmatprep.subr.msk.bf16.mxu0 %vm128_vm0, %v116_v11  ;;  %712 = vmatpush1.bf16.msra.mxu1 %v1161_v21  ;;  %v1188_v41 = vld [vmem:[#allocation2 + $0x80] ss:$8 sps:$4 sm:$0xff]   ;;  %v1193_v43 = vld [vmem:[#allocation2 + $0x134] ss:$8 sps:$4 sm:$0xff]   ;;  %v1194_v45 = vld [vmem:[#allocation2 + $0x90] ss:$8 sps:$4 sm:$0xff]  }
  0x33   :  { %142 = vmatpush1.bf16.msra.mxu0 %v130_v12  ;;  %713 = vmatprep.subr.bf16.mxu1 %v1162_v22  ;;  %v1195_v46 = vld [vmem:[#allocation2 + $0xa4] ss:$8 sps:$4 sm:$0xff]   ;;  %v1197_v48 = vld [vmem:[#allocation2 + $0x140] ss:$8 sps:$4 sm:$0xff]   ;;  %v1201_v50 = vld [vmem:[#allocation2 + $0xb4] ss:$8 sps:$4 sm:$0xff]  }
  0x34   :  { %1025 = vmatprep.subr.msk.bf16.mxu0 %vm128_vm0, %v117_v16  ;;  %v1199_v47 = vld [vmem:[#allocation2 + $0x144] ss:$8 sps:$4 sm:$0xff]   ;;  %v1200_v49 = vld [vmem:[#allocation2 + $0xa0] ss:$8 sps:$4 sm:$0xff]   ;;  %v1205_v51 = vld [vmem:[#allocation2 + $0x154] ss:$8 sps:$4 sm:$0xff]  }
  0x35   :  { %v1203_v52 = vld [vmem:[#allocation2 + $0x150] ss:$8 sps:$4 sm:$0xff]   ;;  %v1207_v54 = vld [vmem:[#allocation2 + $0xc4] ss:$8 sps:$4 sm:$0xff]   ;;  %v1209_v56 = vld [vmem:[#allocation2 + $0x160] ss:$8 sps:$4 sm:$0xff]  }
  0x36   :  { %1022 = vmatmul.mubr.msk.bf16.vlgmr.msra.gmra.mrb[0].mxu0 %vm118_vm1, %v1150_v15  ;;  %714 = vmatpush1.bf16.msra.mxu1 %v1164_v24  ;;  %v1206_v53 = vld [vmem:[#allocation2 + $0xb0] ss:$8 sps:$4 sm:$0xff]   ;;  %v1211_v55 = vld [vmem:[#allocation2 + $0x164] ss:$8 sps:$4 sm:$0xff]   ;;  %v1212_v57 = vld [vmem:[#allocation2 + $0xc0] ss:$8 sps:$4 sm:$0xff]  }
  0x37   :  { %205 = vmatpush1.bf16.msra.mxu0 %v136_v18  ;;  %183 = vmatprep.mubr.bf16.mxu0 %v1368_v3  ;;  %v1213_v58 = vld [vmem:[#allocation2 + $0xd4] ss:$8 sps:$4 sm:$0xff]   ;;  %v1215_v60 = vld [vmem:[#allocation2 + $0x170] ss:$8 sps:$4 sm:$0xff]   ;;  %v1219_v62 = vld [vmem:[#allocation2 + $0xe4] ss:$8 sps:$4 sm:$0xff]  }
  0x38   :  { %750 = vmatprep.subr.bf16.mxu0 %v1175_v25  ;;  %715 = vmatprep.subr.bf16.mxu1 %v1165_v26  ;;  %v1217_v59 = vld [vmem:[#allocation2 + $0x174] ss:$8 sps:$4 sm:$0xff]   ;;  %v1218_v61 = vld [vmem:[#allocation2 + $0xd0] ss:$8 sps:$4 sm:$0xff]   ;;  %v1223_v63 = vld [vmem:[#allocation2 + $0x184] ss:$8 sps:$4 sm:$0xff]  }
  0x39   :  { %v1221_v1 = vld [vmem:[#allocation2 + $0x180] ss:$8 sps:$4 sm:$0xff]   ;;  %v1229_v5 = vld [vmem:[#allocation2 + $0x194] ss:$8 sps:$4 sm:$0xff]   ;;  %v1227_v6 = vld [vmem:[#allocation2 + $0x190] ss:$8 sps:$4 sm:$0xff]  }
  0x3a   :  { %716 = vmatpush1.bf16.msra.mxu1 %v1167_v27  ;;  %v1224_v2 = vld [vmem:[#allocation2 + $0xe0] ss:$8 sps:$4 sm:$0xff]   ;;  %v1230_v7 = vld [vmem:[#allocation2 + $0xf0] ss:$8 sps:$4 sm:$0xff]   ;;  %v1233_v8 = vld [vmem:[#allocation2 + $0x1a4] ss:$8 sps:$4 sm:$0xff]  }
  0x3b   :  { %717 = vmatprep.subr.bf16.mxu1 %v1168_v28  ;;  %v1231_v9 = vld [vmem:[#allocation2 + $0x1a0] ss:$8 sps:$4 sm:$0xff]   ;;  %v1236_v10 = vld [vmem:[#allocation2 + $0x1b4] ss:$8 sps:$4 sm:$0xff]   ;;  %v1234_v11 = vld [vmem:[#allocation2 + $0x1b0] ss:$8 sps:$4 sm:$0xff]  }
  0x3c   :  { %v1239_v12 = vld [vmem:[#allocation2 + $0x1c4] ss:$8 sps:$4 sm:$0xff]   ;;  %v1237_v13 = vld [vmem:[#allocation2 + $0x1c0] ss:$8 sps:$4 sm:$0xff]   ;;  %v1242_v14 = vld [vmem:[#allocation2 + $0x1d4] ss:$8 sps:$4 sm:$0xff]  }
  0x3d   :  { %v1245_v16 = vld [vmem:[#allocation2 + $0x1e4] ss:$8 sps:$4 sm:$0xff]   ;;  %v1243_v17 = vld [vmem:[#allocation2 + $0x1e0] ss:$8 sps:$4 sm:$0xff]   ;;  %v1248_v18 = vld [vmem:[#allocation2 + $0x1f4] ss:$8 sps:$4 sm:$0xff]  }
  0x3e   :  { %1023 = vmatmul.mubr.msk.bf16.gmra.mrb[4].mxu0 %vm118_vm1, %v1151_v23  ;;  %718 = vmatpush1.bf16.msra.mxu1 %v1170_v30  ;;  %v1246_v19 = vld [vmem:[#allocation2 + $0x1f0] ss:$8 sps:$4 sm:$0xff]   ;;  %v67_v21 = vsub.s32 0, %v1439_v4  ;;  %v71_v24 = vsub.s32 1, %v1439_v4 }
  0x3f   :  { %193 = vmatprep.mubr.bf16.mxu0 %v1368_v3  ;;  %719 = vmatprep.subr.bf16.mxu1 %v1171_v31 }
  0x42   :  { %720 = vmatpush1.bf16.msra.mxu1 %v1176_v32 }
  0x43   :  { %721 = vmatprep.subr.bf16.mxu1 %v1177_v34 }
  0x46   :  { %1024 = vmatmul.mubr.msk.bf16.gmra.mrb[8].mxu0 %vm118_vm1, %v1152_v29  ;;  %722 = vmatpush1.bf16.msra.mxu1 %v1182_v37 }
  0x47   :  { %236 = vmatprep.mubr.bf16.mxu0 %v1368_v3  ;;  %723 = vmatprep.subr.bf16.mxu1 %v1183_v38 }
  0x4a   :  { %724 = vmatpush1.bf16.msra.mxu1 %v1188_v41 }
  0x4b   :  { %725 = vmatprep.subr.bf16.mxu1 %v1189_v42 }
  0x4e   :  { %1026 = vmatmul.mubr.msk.bf16.vlgmr.msra.gmra.mrb[12].mxu0 %vm118_vm1, %v1150_v15  ;;  %726 = vmatpush1.bf16.msra.mxu1 %v1194_v45  ;;  %v1240_v15 = vld [vmem:[#allocation2 + $0x1d0] ss:$8 sps:$4 sm:$0xff]  }
  0x4f   :  { %246 = vmatprep.mubr.bf16.mxu0 %v1368_v3  ;;  %751 = vmatpush1.bf16.msra.mxu0 %v1173_v33 }
  0x50   :  { %752 = vmatprep.subr.bf16.mxu0 %v1181_v35  ;;  %727 = vmatprep.subr.bf16.mxu1 %v1195_v46 }
  0x52   :  { %728 = vmatpush1.bf16.msra.mxu1 %v1200_v49 }
  0x53   :  { %753 = vmatpush1.bf16.msra.mxu0 %v1179_v36  ;;  %729 = vmatprep.subr.bf16.mxu1 %v1201_v50 }
  0x54   :  { %754 = vmatprep.subr.bf16.mxu0 %v1187_v39 }
  0x56   :  { %1027 = vmatmul.mubr.msk.bf16.gmra.mrb[16].mxu0 %vm118_vm1, %v1151_v23  ;;  %730 = vmatpush1.bf16.msra.mxu1 %v1206_v53  ;;  %v63_v23 = vld [vmem:[%s1508_s2] sm:$0xf] }
  0x57   :  { %256 = vmatprep.mubr.bf16.mxu0 %v1368_v3  ;;  %755 = vmatpush1.bf16.msra.mxu0 %v1185_v40  ;;  %v1225_v3 = vld [vmem:[#allocation2 + $0xf4] ss:$8 sps:$4 sm:$0xff]   ;;  %v68_v27 = vrot.slane %v63_v23, %v67_v21  ;;  %v72_v28 = vrot.slane %v63_v23, %v71_v24 }
  0x58   :  { %756 = vmatprep.subr.bf16.mxu0 %v1193_v43  ;;  %731 = vmatprep.subr.bf16.mxu1 %v1207_v54 }
  0x5a   :  { %732 = vmatpush1.bf16.msra.mxu1 %v1212_v57 }
  0x5b   :  { %757 = vmatpush1.bf16.msra.mxu0 %v1191_v44  ;;  %733 = vmatprep.subr.bf16.mxu1 %v1213_v58  ;;  %v75_v58 = vsub.s32 2, %v1439_v4 }
  0x5c   :  { %758 = vmatprep.subr.bf16.mxu0 %v1199_v47 }
  0x5e   :  { %1028 = vmatmul.mubr.msk.bf16.gmra.mrb[20].mxu0 %vm118_vm1, %v1152_v29  ;;  %734 = vmatpush1.bf16.msra.mxu1 %v1218_v61  ;;  %v79_v61 = vsub.s32 3, %v1439_v4  ;;  %v976_v4 = vand.u32 127, %v65_v0 }
  0x5f   :  { %759 = vmatpush1.bf16.msra.mxu0 %v1197_v48  ;;  %735 = vmatprep.subr.bf16.mxu1 %v1219_v62 }
  0x60   :  { %760 = vmatprep.subr.bf16.mxu0 %v1205_v51  ;;  %vm977_vm2 = vcmp.lt.s32.totalorder %v976_v4, 2 }
  0x62   :  { %736 = vmatpush1.bf16.msra.mxu1 %v1224_v2 }
  0x63   :  { %761 = vmatpush1.bf16.msra.mxu0 %v1203_v52  ;;  %737 = vmatprep.subr.bf16.mxu1 %v1225_v3 }
  0x64   :  { %762 = vmatprep.subr.bf16.mxu0 %v1211_v55 }
  0x66   :  { %738 = vmatpush1.bf16.msra.mxu1 %v1230_v7 }
  0x67   :  { %763 = vmatpush1.bf16.msra.mxu0 %v1209_v56 }
  0x68   :  { %764 = vmatprep.subr.bf16.mxu0 %v1217_v59 }
  0x6b   :  { %765 = vmatpush1.bf16.msra.mxu0 %v1215_v60 }
  0x6c   :  { %766 = vmatprep.subr.bf16.mxu0 %v1223_v63 }
  0x6f   :  { %767 = vmatpush1.bf16.msra.mxu0 %v1221_v1 }
  0x70   :  { %768 = vmatprep.subr.bf16.mxu0 %v1229_v5 }
  0x73   :  { %769 = vmatpush1.bf16.msra.mxu0 %v1227_v6 }
  0x74   :  { %770 = vmatprep.subr.bf16.mxu0 %v1233_v8 }
  0x77   :  { %771 = vmatpush1.bf16.msra.mxu0 %v1231_v9  ;;  %v76_v9 = vrot.slane %v63_v23, %v75_v58 }
  0x78   :  { %772 = vmatprep.subr.bf16.mxu0 %v1236_v10 }
  0x7b   :  { %773 = vmatpush1.bf16.msra.mxu0 %v1234_v11 }
  0x7c   :  { %774 = vmatprep.subr.bf16.mxu0 %v1239_v12 }
  0x7f   :  { %775 = vmatpush1.bf16.msra.mxu0 %v1237_v13  ;;  %v80_v13 = vrot.slane %v63_v23, %v79_v61  ;;  %v1249_v61 = vld [vmem:[#allocation5 + $0x40] sm:$0xff]  }
  0x80   :  { %776 = vmatprep.subr.bf16.mxu0 %v1242_v14  ;;  %1110 = vmatprep.subr.bf16.mxu1 %v1249_v61 }
  0x83   :  { %777 = vmatpush1.bf16.msra.mxu0 %v1240_v15 }
  0x84   :  { %778 = vmatprep.subr.bf16.mxu0 %v1245_v16 }
  0x87   :  { %779 = vmatpush1.bf16.msra.mxu0 %v1243_v17 }
  0x88   :  { %780 = vmatprep.subr.bf16.mxu0 %v1248_v18 }
  0x8b   :  { %781 = vmatpush1.bf16.msra.mxu0 %v1246_v19 }
 0x109   :  { %v175_v20 = vpop.f32.mrb[0].mxu0 }
 0x10a   :  { %v177_v22 = vpop.f32.mrb[1].mxu0  ;;  %v176_v30 = vadd.f32 %v175_v20, %v68_v27 }
 0x10b   :  { %v179_v25 = vpop.f32.mrb[2].mxu0  ;;  %v178_v33 = vadd.f32 %v177_v22, %v72_v28 }
 0x10c   :  { %v181_v26 = vpop.f32.mrb[3].mxu0  ;;  %v180_v36 = vadd.f32 %v179_v25, %v68_v27 }
 0x10d   :  { %v182_v40 = vadd.f32 %v181_v26, %v72_v28 }
 0x111   :  { %v185_v29 = vpop.f32.mrb[4].mxu0 }
 0x112   :  { %v186_v31 = vadd.f32 %v185_v29, %v68_v27  ;;  %v187_v32 = vpop.f32.mrb[5].mxu0 }
 0x113   :  { %v188_v34 = vadd.f32 %v187_v32, %v72_v28  ;;  %v189_v35 = vpop.f32.mrb[6].mxu0 }
 0x114   :  { %v267_v37 = vmul.f32 %v186_v31, %v176_v30  ;;  %v190_v38 = vadd.f32 %v189_v35, %v68_v27  ;;  %v191_v39 = vpop.f32.mrb[7].mxu0 }
 0x115   :  { %v268_v41 = vmul.f32 %v188_v34, %v178_v33  ;;  %v192_v42 = vadd.f32 %v191_v39, %v72_v28 }
 0x116   :  { %v275_v43 = vsub.f32 %v267_v37, %v267_v37  ;;  %v271_v44 = vmul.f32 %v190_v38, %v180_v36 }
 0x117   :  { %v276_v45 = vsub.f32 %v268_v41, %v268_v41  ;;  %v272_v46 = vmul.f32 %v192_v42, %v182_v40 }
 0x118   :  { %v283_v47 = vmul.f32 1.442695, %v275_v43  ;;  %v279_v48 = vsub.f32 %v271_v44, %v271_v44 }
 0x119   :  { %v285_v49 = vmul.f32 1.442695, %v276_v45  ;;  %v280_v50 = vsub.f32 %v272_v46, %v272_v46  ;;  %v195_v51 = vpop.f32.mrb[8].mxu0 }
 0x11a   :  { %1265 = vpow2.f32 %v283_v47  ;;  %v291_v52 = vmul.f32 1.442695, %v279_v48  ;;  %v197_v53 = vpop.f32.mrb[9].mxu0  ;;  %v196_v60 = vadd.f32 %v195_v51, %v68_v27 }
 0x11b   :  { %1267 = vpow2.f32 %v285_v49  ;;  %v293_v54 = vmul.f32 1.442695, %v280_v50  ;;  %v199_v55 = vpop.f32.mrb[10].mxu0  ;;  %v198_v1 = vadd.f32 %v197_v53, %v72_v28 }
 0x11c   :  { %1269 = vpow2.f32 %v291_v52  ;;  %v201_v56 = vpop.f32.mrb[11].mxu0  ;;  %v200_v6 = vadd.f32 %v199_v55, %v68_v27 }
 0x11d   :  { %1271 = vpow2.f32 %v293_v54  ;;  %v202_v8 = vadd.f32 %v201_v56, %v72_v28 }
 0x121   :  { %v238_v57 = vpop.f32.mrb[12].mxu0 }
 0x122   :  { %v240_v59 = vpop.f32.mrb[13].mxu0  ;;  %v239_v17 = vadd.f32 %v238_v57, %v76_v9 }
 0x123   :  { %v242_v62 = vpop.f32.mrb[14].mxu0  ;;  %v241_v22 = vadd.f32 %v240_v59, %v80_v13 }
 0x124   :  { %v1266_v63 = vpop.eup %1265  ;;  %v244_v2 = vpop.f32.mrb[15].mxu0  ;;  %v243_v29 = vadd.f32 %v242_v62, %v76_v9  ;;  %v1250_v62 = vld [vmem:[#allocation5] sm:$0xff]  }
 0x125   :  { %v1268_v3 = vpop.eup %1267  ;;  %v299_v5 = vmul.f32 %v1266_v63, %v196_v60  ;;  %v245_v28 = vadd.f32 %v244_v2, %v80_v13  ;;  %v1251_v63 = vld [vmem:[#allocation5 + $0x48] sm:$0xff]   ;;  %v1253_v2 = vld [vmem:[#allocation5 + $0x50] sm:$0xff]  }
 0x126   :  { %v1270_v7 = vpop.eup %1269  ;;  %v300_v10 = vmul.f32 %v1268_v3, %v198_v1  ;;  %v1252_v1 = vld [vmem:[#allocation5 + $0x8] sm:$0xff]   ;;  %v1254_v3 = vld [vmem:[#allocation5 + $0x10] sm:$0xff]  }
 0x127   :  { %v1272_v11 = vpop.eup %1271  ;;  %v303_v12 = vmul.f32 %v1270_v7, %v200_v6  ;;  %v1256_v6 = vld [vmem:[#allocation5 + $0x18] sm:$0xff]   ;;  %v1257_v7 = vld [vmem:[#allocation5 + $0x60] sm:$0xff]  }
 0x128   :  { %v304_v14 = vmul.f32 %v1272_v11, %v202_v8  ;;  %v1258_v8 = vld [vmem:[#allocation5 + $0x20] sm:$0xff]   ;;  %v1261_v11 = vld [vmem:[#allocation5 + $0x70] sm:$0xff]  }
 0x129   :  { %v248_v15 = vpop.f32.mrb[16].mxu0  ;;  %v307_v16 = vpack.c.bf16 %v303_v12, %v299_v5  ;;  %v1255_v5 = vld [vmem:[#allocation5 + $0x58] sm:$0xff]   ;;  %v1262_v12 = vld [vmem:[#allocation5 + $0x30] sm:$0xff]  }
 0x12a   :  { %v249_v18 = vadd.f32 %v248_v15, %v76_v9  ;;  %v250_v19 = vpop.f32.mrb[17].mxu0  ;;  %v308_v20 = vpack.c.bf16 %v304_v14, %v300_v10  ;;  %v1260_v10 = vld [vmem:[#allocation5 + $0x28] sm:$0xff]   ;;  %v1264_v14 = vld [vmem:[#allocation5 + $0x38] sm:$0xff]  }
 0x12b   :  { %v251_v25 = vadd.f32 %v250_v19, %v80_v13  ;;  %v252_v26 = vpop.f32.mrb[18].mxu0  ;;  %v375_v19 = vld [vmem:[%s1510_s4] sm:$0x3] }
 0x12c   :  { %v269_v30 = vmul.f32 %v249_v18, %v239_v17  ;;  %v253_v27 = vadd.f32 %v252_v26, %v76_v9  ;;  %v254_v31 = vpop.f32.mrb[19].mxu0  ;;  %739 = vmatprep.mubr.bf16.mxu1 %v308_v20  ;;  %v380_v20 = vrot.slane %v375_v19, %v67_v21 }
 0x12d   :  { %v270_v32 = vmul.f32 %v251_v25, %v241_v22  ;;  %v255_v33 = vadd.f32 %v254_v31, %v80_v13  ;;  %740 = vmatmul.mubr.bf16.vlgmr.msra.gmra.mrb[0].mxu1 %v307_v16  ;;  %v384_v22 = vrot.slane %v375_v19, %v71_v24 }
 0x12e   :  { %v277_v23 = vsub.f32 %v269_v30, %v269_v30  ;;  %v273_v34 = vmul.f32 %v253_v27, %v243_v29  ;;  %1111 = vmatpush3.bf16.msra.mxu1 %v1250_v62 }
 0x12f   :  { %v278_v35 = vsub.f32 %v270_v32, %v270_v32  ;;  %v274_v36 = vmul.f32 %v255_v33, %v245_v28  ;;  %1112 = vmatprep.subr.bf16.mxu1 %v1251_v63 }
 0x130   :  { %v287_v37 = vmul.f32 1.442695, %v277_v23  ;;  %v281_v38 = vsub.f32 %v273_v34, %v273_v34 }
 0x131   :  { %v289_v39 = vmul.f32 1.442695, %v278_v35  ;;  %v282_v40 = vsub.f32 %v274_v36, %v274_v36  ;;  %v258_v41 = vpop.f32.mrb[20].mxu0 }
 0x132   :  { %1273 = vpow2.f32 %v287_v37  ;;  %v295_v42 = vmul.f32 1.442695, %v281_v38  ;;  %v260_v43 = vpop.f32.mrb[21].mxu0  ;;  %v259_v47 = vadd.f32 %v258_v41, %v76_v9  ;;  %1113 = vmatpush3.bf16.msra.mxu1 %v1252_v1 }
 0x133   :  { %1275 = vpow2.f32 %v289_v39  ;;  %v297_v44 = vmul.f32 1.442695, %v282_v40  ;;  %v262_v45 = vpop.f32.mrb[22].mxu0  ;;  %v261_v48 = vadd.f32 %v260_v43, %v80_v13  ;;  %1114 = vmatprep.subr.bf16.mxu1 %v1253_v2 }
 0x134   :  { %1277 = vpow2.f32 %v295_v42  ;;  %v264_v46 = vpop.f32.mrb[23].mxu0  ;;  %v263_v52 = vadd.f32 %v262_v45, %v76_v9  ;;  %v1259_v9 = vld [vmem:[#allocation5 + $0x68] sm:$0xff]   ;;  %v1093_v42 = vld [vmem:[%s1512_s6] ss:$0 sm:$0xff]  ;;  %s1369_s6 = smov [#allocation7]  }
 0x135   :  { %1279 = vpow2.f32 %v297_v44  ;;  %v265_v55 = vadd.f32 %v264_v46, %v80_v13  ;;  %v1263_v13 = vld [vmem:[#allocation5 + $0x78] sm:$0xff]   ;;  %s1005_s16 = sshll.u32 %s1369_s6, 4  ;;  %s1006_s16 = int_to_ptr.vmem [resolvable:$true] %s1005_s16 }
 0x136   :  { %1115 = vmatpush3.bf16.msra.mxu1 %v1254_v3  ;;  %s1333_s17 = scalar_lea.vmem %s1006_s16, 256  ;;  %p1338_p3 = scmp.lt.s32.totalorder %s1006_s16, %s1006_s16 }
 0x137   :  { %1116 = vmatprep.subr.bf16.mxu1 %v1255_v5  ;;  %p1334_p2 = scmp.ne.s32.totalorder %s1006_s16, %s1333_s17  ;;  %p1339_p4 = scmp.lt.s32.totalorder %s1333_s17, %s1333_s17 }
 0x139   :  { %p1340_p5 = por %p1339_p4, %p1338_p3 }
 0x13a   :  { %1117 = vmatpush3.bf16.msra.mxu1 %v1256_v6 }
 0x13b   :  { %1118 = vmatprep.subr.bf16.mxu1 %v1257_v7  ;;  %p1341_p6 = pnand %p1340_p5, %p1334_p2 }
 0x13c   :  { %v1274_v49 = vpop.eup %1273 }
 0x13d   :  { %v1276_v50 = vpop.eup %1275  ;;  %v301_v51 = vmul.f32 %v1274_v49, %v259_v47 }
 0x13e   :  { %v1278_v53 = vpop.eup %1277  ;;  %v302_v54 = vmul.f32 %v1276_v50, %v261_v48  ;;  %1119 = vmatpush3.bf16.msra.mxu1 %v1258_v8 }
 0x13f   :  { %v1280_v56 = vpop.eup %1279  ;;  %v305_v57 = vmul.f32 %v1278_v53, %v263_v52  ;;  %1120 = vmatprep.subr.bf16.mxu1 %v1259_v9 }
 0x140   :  { %v306_v58 = vmul.f32 %v1280_v56, %v265_v55 }
 0x141   :  { %v309_v59 = vpack.c.bf16 %v305_v57, %v301_v51 }
 0x142   :  { %v310_v60 = vpack.c.bf16 %v306_v58, %v302_v54  ;;  %1121 = vmatpush3.bf16.msra.mxu1 %v1260_v10 }
 0x143   :  { %1122 = vmatprep.subr.bf16.mxu1 %v1261_v11 }
 0x144   :  { %782 = vmatprep.mubr.bf16.mxu0 %v310_v60 }
 0x145   :  { %783 = vmatmul.mubr.bf16.vlgmr.msra.gmra.mrb[24].mxu0 %v309_v59 }
 0x146   :  { %1123 = vmatpush3.bf16.msra.mxu1 %v1262_v12 }
 0x147   :  { %1124 = vmatprep.subr.bf16.mxu1 %v1263_v13 }
 0x14a   :  { %1125 = vmatpush3.bf16.msra.mxu1 %v1264_v14 }
 0x200   :  { %v741_v15 = vpop.f32.mrb[0].mxu1 }
 0x201   :  { %v743_v16 = vpop.f32.mrb[1].mxu1  ;;  %v742_v25 = vadd.f32 %v741_v15, %v380_v20 }
 0x202   :  { %v745_v17 = vpop.f32.mrb[2].mxu1  ;;  %v744_v26 = vadd.f32 %v743_v16, %v384_v22 }
 0x203   :  { %v747_v18 = vpop.f32.mrb[3].mxu1  ;;  %v746_v30 = vadd.f32 %v745_v17, %v380_v20 }
 0x204   :  { %v748_v28 = vadd.f32 %v747_v18, %v384_v22 }
 0x218   :  { %v784_v29 = vpop.f32.mrb[24].mxu0 }
 0x219   :  { %v785_v27 = vadd.f32 %v784_v29, %v742_v25  ;;  %v786_v31 = vpop.f32.mrb[25].mxu0 }
 0x21a   :  { %v787_v32 = vadd.f32 %v786_v31, %v744_v26  ;;  %v788_v33 = vpop.f32.mrb[26].mxu0 }
 0x21b   :  { %v789_v23 = vadd.f32 %v788_v33, %v746_v30  ;;  %v790_v34 = vpop.f32.mrb[27].mxu0  ;;  %v793_v36 = vmax.f32 %v785_v27, 0.0 }
 0x21c   :  { %v791_v35 = vadd.f32 %v790_v34, %v748_v28  ;;  %v794_v38 = vmax.f32 %v787_v32, 0.0 }
 0x21d   :  { %v795_v37 = vmax.f32 %v789_v23, 0.0 }
 0x21e   :  { %v796_v39 = vmax.f32 %v791_v35, 0.0 }
 0x21f   :  { %v797_v21 = vpack.c.bf16 %v795_v37, %v793_v36 }
 0x220   :  { %v798_v40 = vpack.c.bf16 %v796_v39, %v794_v38 }
 0x222   :  { %966 = vmatprep.mubr.bf16.mxu1 %v798_v40 }
 0x223   :  { %967 = vmatmul.mubr.bf16.vlgmr.msra.gmra.mrb[4].mxu1 %v797_v21 }
 0x2f6   :  { %v1126_v24 = vpop.f32.mrb[4].mxu1 }
 0x2f7   :  { %v1127_v41 = vpop.f32.mrb[5].mxu1 }
 0x2f8   :  { %v1128_v43 = vadd.f32 %v1127_v41, %v1126_v24  ;;  %v1129_v44 = vpop.f32.mrb[6].mxu1 }
 0x2f9   :  { %v1130_v45 = vpop.f32.mrb[7].mxu1 }
 0x2fa   :  { %v1131_v46 = vadd.f32 %v1130_v45, %v1129_v44  ;;  %v969_v47 = vadd.f32 %v1128_v43, %v1093_v42 }
 0x2fc   :  { %v978_v48 = vsel %vm977_vm2, %v969_v47, -inf  ;;  %v972_v49 = vadd.f32 %v1131_v46, %v1093_v42 }
 0x2fd   :  { %980 = vmax.xlane.f32.xlu0 %v978_v48 }
 0x2fe   :  { %v979_v50 = vsel %vm977_vm2, %v972_v49, -inf }
 0x301   :  { %982 = vmax.xlane.f32.xlu0 %v979_v50 }
 0x38a   :  { %v981_v51 = vpop.xlane.xlu0 %980 }
 0x38b   :  { %v984_v52 = vsub.f32 %v978_v48, %v981_v51 }
 0x38d   :  { %v986_v0 = vmul.f32 1.442695, %v984_v52 }
 0x38e   :  { %v983_v53 = vpop.xlane.xlu0 %982 }
 0x38f   :  { %1281 = vpow2.f32 %v986_v0  ;;  %v985_v54 = vsub.f32 %v979_v50, %v983_v53 }
 0x391   :  { %v988_v55 = vmul.f32 1.442695, %v985_v54 }
 0x393   :  { %1283 = vpow2.f32 %v988_v55 }
 0x399   :  { %v1282_v56 = vpop.eup %1281 }
 0x39a   :  { %990 = vadd.xlane.f32.xlu1 %v1282_v56 }
 0x39d   :  { %v1284_v57 = vpop.eup %1283 }
 0x39e   :  { %992 = vadd.xlane.f32.xlu1 %v1284_v57 }
 0x427   :  { %v991_v58 = vpop.xlane.xlu1 %990 }
 0x428   :  { %1285 = vrcp.f32 %v991_v58 }
 0x42b   :  { %v993_v59 = vpop.xlane.xlu1 %992 }
 0x42c   :  { %1287 = vrcp.f32 %v993_v59 }
 0x432   :  { %v1286_v60 = vpop.eup %1285 }
 0x433   :  { %v995_v61 = vmul.f32 %v1286_v60, %v1282_v56 }
 0x435   :  { %998 = vst [vmem:[#allocation7] sm:$0xff] %v995_v61 }
 0x436   :  { %v1288_v62 = vpop.eup %1287 }
 0x437   :  { %v997_v63 = vmul.f32 %v1288_v62, %v1284_v57 }
 0x439   :  { %999 = vst [vmem:[#allocation7 + $0x8] sm:$0xff] %v997_v63 }
 0x43a   :  { %1344 = shalt.err (!%p1341_p6)
}
 0x43b   :  { %s1345_s20 = scalar_lea.hbm %s1513_s7, 256 }
 0x43c   :  { %p1346_p7 = scmp.ne.s32.totalorder %s1513_s7, %s1345_s20  ;;  %p1349_p8 = scmp.lt.u32.totalorder %s1345_s20, %s1513_s7 }
 0x43e   :  { %p1351_p9 = pnand %p1349_p8, %p1346_p7 }
 0x440   :  { %1354 = shalt.err (!%p1351_p9)
}
 0x441   :  { %1011 = dma.vmem_to_hbm [thread:$0]  %s1006_s16, 256, %s1513_s7, [#allocation4], %s1362_s11, %s1362_s11, %s1363_s12  }
 0x442   :  { %1359 = dma.done.wait [#allocation4], 256  }
 0x443   :  { %1360 = vsyncadd [#allocation4], 4294967040 }
 0x444   :  { %1015 = vsyncpa [#allocation3], 1 }
 0x445   :  { %1016 = vsyncpa [#allocation6], 1 }
 0x446   :  { %1017 = vsyncpa [#allocation4], 1 }

</bundles_post_ra>
